<compile_context>
chip_gen: v7x
topology: tpu7x:2x2x1
jax: 0.10.0
libtpu: 0.0.40
codegen_flags: <defaults>
</compile_context>

<pallas_src>
import functools

import jax
import jax.numpy as jnp
from jax.experimental import pallas as pl
from jax.experimental.pallas import tpu as pltpu

_LANES = 128


def _ce2d_kernel(logit_ref, tgt_ref, loss_ref, cnt_ref, *,
                 num_classes, ignore_index, n_pixels, tile_s, acc_s,
                 need_tail_mask):
    jp = pl.program_id(1)

    @pl.when(jp == 0)
    def _init():
        loss_ref[...] = jnp.zeros_like(loss_ref)
        cnt_ref[...] = jnp.zeros_like(cnt_ref)

    tgt = tgt_ref[...]                                   # (tile_s, 128) int32

    # Running max over the class axis.  Each class plane is a dense
    # (sublane, lane) tile, so this is pure VALU work (no cross-lane XLU).
    m = logit_ref[0].astype(jnp.float32)                 # (tile_s, 128)
    for ci in range(1, num_classes):
        m = jnp.maximum(m, logit_ref[ci].astype(jnp.float32))

    # Second pass: sum of exp (EUP) and one-hot gather of the target logit.
    s = jnp.zeros_like(m)
    picked = jnp.zeros_like(m)
    for ci in range(num_classes):
        xc = logit_ref[ci].astype(jnp.float32)
        s = s + jnp.exp(xc - m)
        picked = picked + jnp.where(tgt == ci, xc, 0.0)
    lse = jnp.log(s) + m                                 # (tile_s, 128)

    # NOTE: out-of-range targets (not equal to ignore_index) yield picked = 0,
    # i.e. loss = lse, whereas PyTorch would raise.  Documented divergence.
    valid = tgt != ignore_index
    if need_tail_mask:
        # Position mask for padded lanes / partial last pixel tile: garbage
        # data beyond the real pixel count must never count as valid.
        sub = jax.lax.broadcasted_iota(jnp.int32, tgt.shape, 0)
        lane = jax.lax.broadcasted_iota(jnp.int32, tgt.shape, 1)
        pos = (jp * tile_s + sub) * _LANES + lane
        valid = valid & (pos < n_pixels)

    per = jnp.where(valid, lse - picked, 0.0)            # (tile_s, 128)
    cnt = valid.astype(jnp.float32)

    if tile_s != acc_s:
        # Fold sublane rows down to the accumulator height (elementwise adds
        # of (acc_s, 128) slabs — still VALU only).
        per = jnp.sum(per.reshape(tile_s // acc_s, acc_s, _LANES), axis=0)
        cnt = jnp.sum(cnt.reshape(tile_s // acc_s, acc_s, _LANES), axis=0)

    loss_ref[...] += per
    cnt_ref[...] += cnt


def cross_entropy_2d(output, target, *, ignore_index, reduction="mean",
                     weight=None, resize_scores=True,
                     target_block_bytes=4 << 20):
    """Pallas equivalent of CrossEntropy2D.forward.

    output: (b, c, h, w) float logits (NCHW, like PyTorch)
    target: (b, th, tw) int labels
    """
    # TODO(synk): per-class `weight` rescaling is not implemented (module default is None).
    assert weight is None, "weight is not supported in this kernel"

    b, c, h, w = output.shape
    tb, th, tw = target.shape
    assert b == tb

    if resize_scores:
        if h != th or w != tw:
            # Glue: bilinear resize (align_corners=False == half-pixel centers).
            output = jax.image.resize(output, (b, c, th, tw), method="bilinear")
            h, w = th, tw
    else:
        if h != th or w != tw:
            target = jax.image.resize(
                target.astype(jnp.float32)[:, None, :, :], (b, 1, h, w),
                method="nearest")[:, 0, :, :].astype(jnp.int32)
            th, tw = h, w

    n_pixels = h * w
    p_s = -(-n_pixels // _LANES)            # sublane rows of pixels (ceil)
    p_pad = p_s * _LANES

    # NCHW -> (b, c, P) is a free reshape (no transpose).  Only the ragged
    # lane tail (rare: P % 128 != 0) needs a pad.
    logits = output.reshape(b, c, n_pixels)
    tgt = target.reshape(b, n_pixels).astype(jnp.int32)
    if p_pad != n_pixels:
        logits = jnp.pad(logits, ((0, 0), (0, 0), (0, p_pad - n_pixels)))
        tgt = jnp.pad(tgt, ((0, 0), (0, p_pad - n_pixels)),
                      constant_values=ignore_index)
    logits = logits.reshape(b, c, p_s, _LANES)
    tgt = tgt.reshape(b, p_s, _LANES)

    # Tile size: ~target_block_bytes of logits per block, multiple of 8
    # sublane rows.  Double-buffered working set stays well inside the scoped
    # VMEM default on v5e/v6e/v7x, so no vmem_limit override is needed.
    itemsize = jnp.dtype(output.dtype).itemsize
    tile_s = target_block_bytes // (c * _LANES * itemsize)
    tile_s = max(8, (tile_s // 8) * 8)
    if p_s <= tile_s:
        tile_s = p_s
    n_jp = -(-p_s // tile_s)
    need_tail_mask = (p_pad != n_pixels) or (p_s % tile_s != 0)
    acc_s = 8 if tile_s % 8 == 0 else tile_s

    kernel = functools.partial(
        _ce2d_kernel, num_classes=c, ignore_index=ignore_index,
        n_pixels=n_pixels, tile_s=tile_s, acc_s=acc_s,
        need_tail_mask=need_tail_mask)

    loss_parts, cnt_parts = pl.pallas_call(
        kernel,
        out_shape=(jax.ShapeDtypeStruct((b, acc_s, _LANES), jnp.float32),
                   jax.ShapeDtypeStruct((b, acc_s, _LANES), jnp.float32)),
        grid_spec=pltpu.PrefetchScalarGridSpec(
            num_scalar_prefetch=0,
            grid=(b, n_jp),
            in_specs=[
                pl.BlockSpec((pl.Squeezed(), c, tile_s, _LANES),
                             lambda bi, jp: (bi, 0, jp, 0)),
                pl.BlockSpec((pl.Squeezed(), tile_s, _LANES),
                             lambda bi, jp: (bi, jp, 0)),
            ],
            out_specs=[
                pl.BlockSpec((pl.Squeezed(), acc_s, _LANES),
                             lambda bi, jp: (bi, 0, 0)),
                pl.BlockSpec((pl.Squeezed(), acc_s, _LANES),
                             lambda bi, jp: (bi, 0, 0)),
            ],
        ),
        compiler_params=pltpu.CompilerParams(
            dimension_semantics=("parallel", "arbitrary")),
    )(logits, tgt)

    loss_sum = jnp.sum(loss_parts)
    valid_cnt = jnp.sum(cnt_parts)

    if reduction == "mean":
        return loss_sum / valid_cnt
    elif reduction == "sum":
        return loss_sum
    else:
        # TODO(synk): reduction='none' (per-pixel loss map) not implemented.
        raise NotImplementedError(
            "reduction='none' not supported by this kernel")


def _reference_ce2d(output, target, ignore_index):
    """Plain-JAX reference (matches F.cross_entropy with reduction='mean')."""
    b, c, h, w = output.shape
    tb, th, tw = target.shape
    if (h, w) != (th, tw):
        output = jax.image.resize(output, (b, c, th, tw), method="bilinear")
    logits = jnp.transpose(output, (0, 2, 3, 1)).reshape(-1, c).astype(jnp.float32)
    tgt = target.reshape(-1).astype(jnp.int32)
    lse = jax.scipy.special.logsumexp(logits, axis=-1)
    picked = jnp.take_along_axis(
        logits, jnp.clip(tgt, 0, c - 1)[:, None], axis=-1)[:, 0]
    valid = (tgt != ignore_index)
    per = jnp.where(valid, lse - picked, 0.0)
    return jnp.sum(per) / jnp.sum(valid.astype(jnp.float32))


if __name__ == "__main__":
    key = jax.random.PRNGKey(0)
    k1, k2, k3, k4 = jax.random.split(key, 4)
    ignore_index = -1

    # Case 1: b=2, c=4, 16x16 (P = 256 pixels, exactly 2 sublane rows).
    b, c, h, w = 2, 4, 16, 16
    output = jax.random.normal(k1, (b, c, h, w), dtype=jnp.float32)
    target = jax.random.randint(k2, (b, h, w), minval=-1, maxval=c,
                                dtype=jnp.int32)  # -1 pixels are ignored
    loss = cross_entropy_2d(output, target, ignore_index=ignore_index,
                            reduction="mean")
    loss = jax.block_until_ready(loss)
    ref = _reference_ce2d(output, target, ignore_index)
    assert jnp.allclose(loss, ref, rtol=1e-4, atol=1e-5), (loss, ref)

    # Case 2: ragged pixel count (10x10 = 100 < 128) exercising the tail mask.
    h2, w2 = 10, 10
    output2 = jax.random.normal(k3, (b, c, h2, w2), dtype=jnp.float32)
    target2 = jax.random.randint(k4, (b, h2, w2), minval=-1, maxval=c,
                                 dtype=jnp.int32)
    loss2 = cross_entropy_2d(output2, target2, ignore_index=ignore_index,
                             reduction="mean")
    loss2 = jax.block_until_ready(loss2)
    ref2 = _reference_ce2d(output2, target2, ignore_index)
    assert jnp.allclose(loss2, ref2, rtol=1e-4, atol=1e-5), (loss2, ref2)

    print("KERNEL_OK")
</pallas_src>

<mosaic_0001>
module attributes {stable_mosaic.version = 11 : i64} {
  func.func @_ce2d_kernel(%arg0: i32, %arg1: i32, %arg2: memref<1x4x2x128xf32, #tpu.memory_space<vmem>>, %arg3: memref<1x2x128xi32, #tpu.memory_space<vmem>>, %arg4: memref<1x2x128xf32, #tpu.memory_space<vmem>>, %arg5: memref<1x2x128xf32, #tpu.memory_space<vmem>>) attributes {dimension_semantics = [#tpu.dimension_semantics<parallel>, #tpu.dimension_semantics<arbitrary>], iteration_bounds = array<i64: 2, 1>, scalar_prefetch = 0 : i64, scratch_operands = 0 : i64, tpu.core_type = #tpu.core_type<tc>, window_params = [{transform_indices = @transform_0, window_bounds = array<i64: 1, 4, 2, 128>}, {transform_indices = @transform_1, window_bounds = array<i64: 1, 2, 128>}, {transform_indices = @transform_2, window_bounds = array<i64: 1, 2, 128>}, {transform_indices = @transform_3, window_bounds = array<i64: 1, 2, 128>}]} {
    %c0_i32 = arith.constant 0 : i32
    %0 = arith.cmpi eq, %arg1, %c0_i32 : i32
    %1 = arith.extui %0 : i1 to i32
    %c0_i32_0 = arith.constant 0 : i32
    %2 = arith.cmpi ne, %1, %c0_i32_0 : i32
    scf.if %2 {
      %cst_51 = arith.constant 0.000000e+00 : f32
      %79 = vector.broadcast %cst_51 : f32 to vector<2x128xf32>
      %c0_52 = arith.constant 0 : index
      %c0_53 = arith.constant 0 : index
      %c0_54 = arith.constant 0 : index
      %80 = vector.load %arg4[%c0_52, %c0_53, %c0_54] : memref<1x2x128xf32, #tpu.memory_space<vmem>>, vector<1x2x128xf32>
      %81 = vector.shape_cast %80 : vector<1x2x128xf32> to vector<2x128xf32>
      %82 = vector.shape_cast %79 : vector<2x128xf32> to vector<1x2x128xf32>
      tpu.vector_store %arg4[%c0_52, %c0_53, %c0_54], %82 {strides = array<i32>} : memref<1x2x128xf32, #tpu.memory_space<vmem>>, vector<1x2x128xf32>,
      %cst_55 = arith.constant 0.000000e+00 : f32
      %83 = vector.broadcast %cst_55 : f32 to vector<2x128xf32>
      %c0_56 = arith.constant 0 : index
      %c0_57 = arith.constant 0 : index
      %c0_58 = arith.constant 0 : index
      %84 = vector.load %arg5[%c0_56, %c0_57, %c0_58] : memref<1x2x128xf32, #tpu.memory_space<vmem>>, vector<1x2x128xf32>
      %85 = vector.shape_cast %84 : vector<1x2x128xf32> to vector<2x128xf32>
      %86 = vector.shape_cast %83 : vector<2x128xf32> to vector<1x2x128xf32>
      tpu.vector_store %arg5[%c0_56, %c0_57, %c0_58], %86 {strides = array<i32>} : memref<1x2x128xf32, #tpu.memory_space<vmem>>, vector<1x2x128xf32>,
    } else {
    }
    %c0 = arith.constant 0 : index
    %c0_1 = arith.constant 0 : index
    %c0_2 = arith.constant 0 : index
    %3 = vector.load %arg3[%c0, %c0_1, %c0_2] : memref<1x2x128xi32, #tpu.memory_space<vmem>>, vector<1x2x128xi32>
    %4 = vector.shape_cast %3 : vector<1x2x128xi32> to vector<2x128xi32>
    %c0_3 = arith.constant 0 : index
    %c0_4 = arith.constant 0 : index
    %c0_5 = arith.constant 0 : index
    %c0_6 = arith.constant 0 : index
    %5 = vector.load %arg2[%c0_3, %c0_4, %c0_5, %c0_6] : memref<1x4x2x128xf32, #tpu.memory_space<vmem>>, vector<1x1x2x128xf32>
    %6 = vector.shape_cast %5 : vector<1x1x2x128xf32> to vector<2x128xf32>
    %c0_7 = arith.constant 0 : index
    %c1 = arith.constant 1 : index
    %c0_8 = arith.constant 0 : index
    %c0_9 = arith.constant 0 : index
    %7 = vector.load %arg2[%c0_7, %c1, %c0_8, %c0_9] : memref<1x4x2x128xf32, #tpu.memory_space<vmem>>, vector<1x1x2x128xf32>
    %8 = vector.shape_cast %7 : vector<1x1x2x128xf32> to vector<2x128xf32>
    %9 = arith.maximumf %6, %8 : vector<2x128xf32>
    %c0_10 = arith.constant 0 : index
    %c2 = arith.constant 2 : index
    %c0_11 = arith.constant 0 : index
    %c0_12 = arith.constant 0 : index
    %10 = vector.load %arg2[%c0_10, %c2, %c0_11, %c0_12] : memref<1x4x2x128xf32, #tpu.memory_space<vmem>>, vector<1x1x2x128xf32>
    %11 = vector.shape_cast %10 : vector<1x1x2x128xf32> to vector<2x128xf32>
    %12 = arith.maximumf %9, %11 : vector<2x128xf32>
    %c0_13 = arith.constant 0 : index
    %c3 = arith.constant 3 : index
    %c0_14 = arith.constant 0 : index
    %c0_15 = arith.constant 0 : index
    %13 = vector.load %arg2[%c0_13, %c3, %c0_14, %c0_15] : memref<1x4x2x128xf32, #tpu.memory_space<vmem>>, vector<1x1x2x128xf32>
    %14 = vector.shape_cast %13 : vector<1x1x2x128xf32> to vector<2x128xf32>
    %15 = arith.maximumf %12, %14 : vector<2x128xf32>
    %cst = arith.constant 0.000000e+00 : f32
    %16 = vector.broadcast %cst : f32 to vector<2x128xf32>
    %cst_16 = arith.constant 0.000000e+00 : f32
    %17 = vector.broadcast %cst_16 : f32 to vector<2x128xf32>
    %c0_17 = arith.constant 0 : index
    %c0_18 = arith.constant 0 : index
    %c0_19 = arith.constant 0 : index
    %c0_20 = arith.constant 0 : index
    %18 = vector.load %arg2[%c0_17, %c0_18, %c0_19, %c0_20] : memref<1x4x2x128xf32, #tpu.memory_space<vmem>>, vector<1x1x2x128xf32>
    %19 = vector.shape_cast %18 : vector<1x1x2x128xf32> to vector<2x128xf32>
    %20 = arith.subf %19, %15 : vector<2x128xf32>
    %21 = math.exp %20 : vector<2x128xf32>
    %22 = arith.addf %16, %21 : vector<2x128xf32>
    %c0_i32_21 = arith.constant 0 : i32
    %23 = vector.broadcast %c0_i32_21 : i32 to vector<2x128xi32>
    %24 = arith.cmpi eq, %4, %23 : vector<2x128xi32>
    %cst_22 = arith.constant 0.000000e+00 : f32
    %25 = vector.broadcast %cst_22 : f32 to vector<2x128xf32>
    %26 = arith.select %24, %19, %25 : vector<2x128xi1>, vector<2x128xf32>
    %27 = arith.addf %17, %26 : vector<2x128xf32>
    %c0_23 = arith.constant 0 : index
    %c1_24 = arith.constant 1 : index
    %c0_25 = arith.constant 0 : index
    %c0_26 = arith.constant 0 : index
    %28 = vector.load %arg2[%c0_23, %c1_24, %c0_25, %c0_26] : memref<1x4x2x128xf32, #tpu.memory_space<vmem>>, vector<1x1x2x128xf32>
    %29 = vector.shape_cast %28 : vector<1x1x2x128xf32> to vector<2x128xf32>
    %30 = arith.subf %29, %15 : vector<2x128xf32>
    %31 = math.exp %30 : vector<2x128xf32>
    %32 = arith.addf %22, %31 : vector<2x128xf32>
    %c1_i32 = arith.constant 1 : i32
    %33 = vector.broadcast %c1_i32 : i32 to vector<2x128xi32>
    %34 = arith.cmpi eq, %4, %33 : vector<2x128xi32>
    %cst_27 = arith.constant 0.000000e+00 : f32
    %35 = vector.broadcast %cst_27 : f32 to vector<2x128xf32>
    %36 = arith.select %34, %29, %35 : vector<2x128xi1>, vector<2x128xf32>
    %37 = arith.addf %27, %36 : vector<2x128xf32>
    %c0_28 = arith.constant 0 : index
    %c2_29 = arith.constant 2 : index
    %c0_30 = arith.constant 0 : index
    %c0_31 = arith.constant 0 : index
    %38 = vector.load %arg2[%c0_28, %c2_29, %c0_30, %c0_31] : memref<1x4x2x128xf32, #tpu.memory_space<vmem>>, vector<1x1x2x128xf32>
    %39 = vector.shape_cast %38 : vector<1x1x2x128xf32> to vector<2x128xf32>
    %40 = arith.subf %39, %15 : vector<2x128xf32>
    %41 = math.exp %40 : vector<2x128xf32>
    %42 = arith.addf %32, %41 : vector<2x128xf32>
    %c2_i32 = arith.constant 2 : i32
    %43 = vector.broadcast %c2_i32 : i32 to vector<2x128xi32>
    %44 = arith.cmpi eq, %4, %43 : vector<2x128xi32>
    %cst_32 = arith.constant 0.000000e+00 : f32
    %45 = vector.broadcast %cst_32 : f32 to vector<2x128xf32>
    %46 = arith.select %44, %39, %45 : vector<2x128xi1>, vector<2x128xf32>
    %47 = arith.addf %37, %46 : vector<2x128xf32>
    %c0_33 = arith.constant 0 : index
    %c3_34 = arith.constant 3 : index
    %c0_35 = arith.constant 0 : index
    %c0_36 = arith.constant 0 : index
    %48 = vector.load %arg2[%c0_33, %c3_34, %c0_35, %c0_36] : memref<1x4x2x128xf32, #tpu.memory_space<vmem>>, vector<1x1x2x128xf32>
    %49 = vector.shape_cast %48 : vector<1x1x2x128xf32> to vector<2x128xf32>
    %50 = arith.subf %49, %15 : vector<2x128xf32>
    %51 = math.exp %50 : vector<2x128xf32>
    %52 = arith.addf %42, %51 : vector<2x128xf32>
    %c3_i32 = arith.constant 3 : i32
    %53 = vector.broadcast %c3_i32 : i32 to vector<2x128xi32>
    %54 = arith.cmpi eq, %4, %53 : vector<2x128xi32>
    %cst_37 = arith.constant 0.000000e+00 : f32
    %55 = vector.broadcast %cst_37 : f32 to vector<2x128xf32>
    %56 = arith.select %54, %49, %55 : vector<2x128xi1>, vector<2x128xf32>
    %57 = arith.addf %47, %56 : vector<2x128xf32>
    %58 = math.log %52 : vector<2x128xf32>
    %59 = arith.addf %58, %15 : vector<2x128xf32>
    %c-1_i32 = arith.constant -1 : i32
    %60 = vector.broadcast %c-1_i32 : i32 to vector<2x128xi32>
    %61 = arith.cmpi ne, %4, %60 : vector<2x128xi32>
    %62 = arith.subf %59, %57 : vector<2x128xf32>
    %cst_38 = arith.constant 0.000000e+00 : f32
    %63 = vector.broadcast %cst_38 : f32 to vector<2x128xf32>
    %64 = arith.select %61, %62, %63 : vector<2x128xi1>, vector<2x128xf32>
    %65 = arith.extui %61 : vector<2x128xi1> to vector<2x128xi32>
    %66 = arith.sitofp %65 : vector<2x128xi32> to vector<2x128xf32>
    %c0_39 = arith.constant 0 : index
    %c0_40 = arith.constant 0 : index
    %c0_41 = arith.constant 0 : index
    %67 = vector.load %arg4[%c0_39, %c0_40, %c0_41] : memref<1x2x128xf32, #tpu.memory_space<vmem>>, vector<1x2x128xf32>
    %68 = vector.shape_cast %67 : vector<1x2x128xf32> to vector<2x128xf32>
    %69 = arith.addf %68, %64 : vector<2x128xf32>
    %c0_42 = arith.constant 0 : index
    %c0_43 = arith.constant 0 : index
    %c0_44 = arith.constant 0 : index
    %70 = vector.load %arg4[%c0_42, %c0_43, %c0_44] : memref<1x2x128xf32, #tpu.memory_space<vmem>>, vector<1x2x128xf32>
    %71 = vector.shape_cast %70 : vector<1x2x128xf32> to vector<2x128xf32>
    %72 = vector.shape_cast %69 : vector<2x128xf32> to vector<1x2x128xf32>
    tpu.vector_store %arg4[%c0_42, %c0_43, %c0_44], %72 {strides = array<i32>} : memref<1x2x128xf32, #tpu.memory_space<vmem>>, vector<1x2x128xf32>,
    %c0_45 = arith.constant 0 : index
    %c0_46 = arith.constant 0 : index
    %c0_47 = arith.constant 0 : index
    %73 = vector.load %arg5[%c0_45, %c0_46, %c0_47] : memref<1x2x128xf32, #tpu.memory_space<vmem>>, vector<1x2x128xf32>
    %74 = vector.shape_cast %73 : vector<1x2x128xf32> to vector<2x128xf32>
    %75 = arith.addf %74, %66 : vector<2x128xf32>
    %c0_48 = arith.constant 0 : index
    %c0_49 = arith.constant 0 : index
    %c0_50 = arith.constant 0 : index
    %76 = vector.load %arg5[%c0_48, %c0_49, %c0_50] : memref<1x2x128xf32, #tpu.memory_space<vmem>>, vector<1x2x128xf32>
    %77 = vector.shape_cast %76 : vector<1x2x128xf32> to vector<2x128xf32>
    %78 = vector.shape_cast %75 : vector<2x128xf32> to vector<1x2x128xf32>
    tpu.vector_store %arg5[%c0_48, %c0_49, %c0_50], %78 {strides = array<i32>} : memref<1x2x128xf32, #tpu.memory_space<vmem>>, vector<1x2x128xf32>,
    return
  }
  func.func @transform_0(%arg0: i32, %arg1: i32) -> (i32, i32, i32, i32) {
    %c0_i32 = arith.constant 0 : i32
    %c0_i32_0 = arith.constant 0 : i32
    %c0_i32_1 = arith.constant 0 : i32
    return %arg0, %c0_i32, %arg1, %c0_i32_0 : i32, i32, i32, i32
  }
  func.func @transform_1(%arg0: i32, %arg1: i32) -> (i32, i32, i32) {
    %c0_i32 = arith.constant 0 : i32
    %c0_i32_0 = arith.constant 0 : i32
    return %arg0, %arg1, %c0_i32 : i32, i32, i32
  }
  func.func @transform_2(%arg0: i32, %arg1: i32) -> (i32, i32, i32) {
    %c0_i32 = arith.constant 0 : i32
    %c0_i32_0 = arith.constant 0 : i32
    %c0_i32_1 = arith.constant 0 : i32
    return %arg0, %c0_i32, %c0_i32_0 : i32, i32, i32
  }
  func.func @transform_3(%arg0: i32, %arg1: i32) -> (i32, i32, i32) {
    %c0_i32 = arith.constant 0 : i32
    %c0_i32_0 = arith.constant 0 : i32
    %c0_i32_1 = arith.constant 0 : i32
    return %arg0, %c0_i32, %c0_i32_0 : i32, i32, i32
  }
}

</mosaic_0001>

<bundles_post_ra>
// kernel: tpu_custom_call.1
= control target key start
LH: loop header
LB: loop body
LE: loop exit
PB: predicated region body
PF: predicated region fallthrough
CT: control target
= control target key end

     0   :  { %9 = vsyncpa [#allocation3], 0  ;;  %s1091_s0 = inlined_call_operand.hbm [shape: f32[2,4,2,128], index: 0, kind: input, shape index: {}]   ;;  %s1092_s1 = inlined_call_operand.hbm [shape: s32[2,2,128], index: 1, kind: input, shape index: {}]   ;;  %s1093_s2 = inlined_call_operand.hbm [shape: f32[2,2,128], index: 2, kind: output, shape index: {0}]   ;;  %s1094_s3 = inlined_call_operand.hbm [shape: f32[2,2,128], index: 3, kind: output, shape index: {1}]  }
   0x1   :  { %11 = vsyncpa [#allocation3 + $0x1], 0 }
   0x2   :  { %12 = vsyncpa [#allocation6], 0 }
   0x3   :  { %14 = vsyncpa [#allocation6 + $0x1], 0 }
   0x4   :  { %15 = vsyncpa [#allocation4], 0 }
   0x5   :  { %17 = vsyncpa [#allocation4 + $0x1], 0 }
   0x6   :  { %18 = vsyncpa [#allocation9], 0 }
   0x7   :  { %20 = vsyncpa [#allocation9 + $0x1], 0  ;;  %s799_s12 = smov 0   ;;  %s801_s13 = smov 0  }
   0x8   :  { %s803_s14 = smov 0   ;;  %s805_s15 = smov 0  }
   0x9   :  { %s807_s16 = smov 0   ;;  %s809_s17 = smov 0  }
   0xa LB: > { %s482_s18 = sadd.s32 4294967295, %s770_s17   ;;  %s483_s19 = sadd.s32 4294967294, %s770_s17   ;;  %s770_s17 = sphi %s809_s17, %s26_s17   ;;  %s766_s16 = sphi %s807_s16, %s1113_s16   ;;  %s762_s15 = sphi %s805_s15, %s1112_s15   ;;  %s758_s14 = sphi %s803_s14, %s1111_s14   ;;  %s754_s13 = sphi %s801_s13, %s1110_s13   ;;  %s750_s12 = sphi %s799_s12, %s1109_s12  }
   0xb   : > { %s38_s20 = sadd.s32 1, %s766_s16  ;;  %s47_s21 = sadd.s32 1, %s758_s14 }
   0xc   : > { %p40_p0 = scmp.ge.s32.totalorder %s38_s20, 2  ;;  %p54_p1 = scmp.ne.s32.totalorder %s758_s14, %s754_s13 }
   0xd   : > { %p55_p2 = scmp.eq.s32.totalorder %s770_s17, 0  ;;  %p60_p3 = scmp.ne.s32.totalorder %s754_s13, %s750_s12 }
   0xe   : > { %s1115_s20 = smov (%p40_p0, %s38_s20), 0  ;;  %p61_p5 = scmp.eq.s32.totalorder %s482_s18, 0 }
   0xf   : > { %p840_p4 = por %p55_p2, %p54_p1  ;;  %s42_s23 = ssub.s32 %s766_s16, %s1115_s20 }
  0x10   : > { %p112_p6 = scmp.eq.s32.totalorder %s482_s18, 1  ;;  %p45_p7 = scmp.eq.s32.totalorder %s42_s23, 0 }
  0x11   : > { %p846_p8 = por %p61_p5, %p60_p3  ;;  %p118_p10 = scmp.eq.s32.totalorder %s483_s19, 1 }
  0x12   : > { %p850_p9 = por %p112_p6, %p54_p1  ;;  %p529_p13 = scmp.lt.s32.totalorder %s770_s17, 2 }
  0x13   : > { %s1098_s24 = scalar_select %p846_p8, 1, 0 }
  0x14   : > { %s1099_s25 = scalar_select %p850_p9, 1, 0 }
  0x15   : > { %s855_s26 = scalar_select %p45_p7, %s758_s14, %s47_s21  }
  0x16   : > { %p857_p11 = por %p118_p10, %p60_p3  ;;  %s864_s28 = sand.u32 1, %s758_s14  }
  0x17   : > { %s486_s29 = sshll.u32 %s864_s28, 3  ;;  %s506_s30 = sshll.u32 %s766_s16, 7 }
  0x18   : > { %s1100_s27 = scalar_select %p857_p11, 1, 0 }
  0x19   : > { %s871_s6 = scalar_lea.hbm %s1091_s0, %s506_s30  ;;  %s168_s7 = scalar_lea.vmem [#allocation2], %s486_s29 }
  0x1a   : > { %s176_s8 = sshll.u32 %s168_s7, 4  ;;  %p877_p0 = pnand %p529_p13, %p840_p4  ;;  %s873_s8 = int_to_ptr.vmem [resolvable:$true] %s176_s8 }
  0x1b   : > { %s165_s10 = scalar_lea.sflag [#allocation3], %s864_s28  ;;  %s592_s11 = scalar_lea.hbm %s871_s6, 128 }
  0x1c   : > { %p593_p2 = scmp.ne.s32.totalorder %s871_s6, %s592_s11  ;;  %p594_p3 = pneg %p877_p0 }
  0x1d   : > { %s597_s21 = scalar_lea.hbm %s1091_s0, 256  ;;  %p598_p4 = scmp.lt.u32.totalorder %s871_s6, %s1091_s0 }
  0x1e   : > { %p595_p5 = pnand %p594_p3, %p593_p2  ;;  %p599_p7 = scmp.lt.u32.totalorder %s597_s21, %s592_s11 }
  0x1f   : > { %p601_p13 = scmp.lt.u32.totalorder %s592_s11, %s871_s6 }
  0x20   : > { %p596_p6 = pneg %p595_p5  ;;  %p600_p10 = por %p599_p7, %p598_p4 }
  0x22   : > { %p602_p12 = por %p601_p13, %p600_p10 }
  0x24   : > { %p603_p1 = pnand %p602_p12, %p596_p6 }
  0x26   : > { %606 = shalt.err (!%p603_p1)
}
  0x27   : > { %s607_s29 = scalar_lea.vmem %s873_s8, 128  ;;  %s772_s30 = smov [#allocation2]  }
  0x28   : > { %p608_p2 = scmp.ne.s32.totalorder %s873_s8, %s607_s29  ;;  %s612_s4 = sshll.u32 %s772_s30, 4  ;;  %s613_s4 = int_to_ptr.vmem [resolvable:$false] %s612_s4 }
  0x29   : > { %s614_s5 = scalar_lea.vmem %s613_s4, 256  ;;  %p615_p9 = scmp.lt.s32.totalorder %s873_s8, %s613_s4 }
  0x2a   : > { %p610_p5 = pnand %p608_p2, %p594_p3  ;;  %p616_p4 = scmp.lt.s32.totalorder %s614_s5, %s607_s29 }
  0x2c   : > { %p611_p11 = pneg %p610_p5  ;;  %p617_p7 = por %p616_p4, %p615_p9 }
  0x2e   : > { %p618_p10 = pnand %p617_p7, %p611_p11 }
  0x30   : > { %621 = shalt.err (!%p618_p10)
}
  0x31   : > { %s773_s7 = smov 32   ;;  %s774_s11 = smov 2  }
  0x32   : > { %518 = dma.hbm_to_vmem [thread:$0]  (!%p877_p0), %s871_s6, 128, %s873_s8, %s165_s10, %s773_s7, %s773_s7, %s774_s11  }
  0x33   : > { %p203_p12 = scmp.lt.s32.totalorder %s770_s17, 3  ;;  %s489_s18 = sshll.u32 %s864_s28, 1 }
  0x34   : > { %s490_s19 = sshll.u32 %s766_s16, 5  ;;  %p1102_p9 = scmp.ge.s32.totalorder %s770_s17, 1 }
  0x35   : > { %s922_s29 = scalar_lea.hbm %s1092_s1, %s490_s19  ;;  %s190_s30 = scalar_lea.vmem [#allocation5], %s489_s18 }
  0x36   : > { %p915_p11 = pnand %p1102_p9, %p203_p12  ;;  %s198_s4 = sshll.u32 %s190_s30, 4  ;;  %s199_s4 = int_to_ptr.vmem [resolvable:$true] %s198_s4 }
  0x37   : > { %s187_s6 = scalar_lea.sflag [#allocation6], %s864_s28  ;;  %s622_s8 = scalar_lea.hbm %s922_s29, 32 }
  0x38   : > { %s1103_s21 = scalar_select %p915_p11, 1, 0 }
  0x39   : > { %p623_p1 = scmp.ne.s32.totalorder %s922_s29, %s622_s8  ;;  %s627_s7 = scalar_lea.hbm %s1092_s1, 64 }
  0x3a   : > { %p628_p2 = scmp.lt.u32.totalorder %s922_s29, %s1092_s1  ;;  %p629_p5 = scmp.lt.u32.totalorder %s627_s7, %s622_s8 }
  0x3b   : > { %p625_p6 = pnand %p623_p1, %p594_p3  ;;  %p631_p7 = scmp.lt.u32.totalorder %s622_s8, %s922_s29 }
  0x3c   : > { %p630_p4 = por %p629_p5, %p628_p2 }
  0x3d   : > { %p626_p13 = pneg %p625_p6 }
  0x3e   : > { %p632_p10 = por %p631_p7, %p630_p4 }
  0x40   : > { %p633_p12 = pnand %p632_p10, %p626_p13 }
  0x42   : > { %636 = shalt.err (!%p633_p12)
}
  0x43   : > { %s637_s28 = scalar_lea.vmem %s199_s4, 32  ;;  %s775_s18 = smov [#allocation5]  }
  0x44   : > { %p638_p9 = scmp.ne.s32.totalorder %s199_s4, %s637_s28  ;;  %s642_s22 = sshll.u32 %s775_s18, 4  ;;  %s643_s22 = int_to_ptr.vmem [resolvable:$false] %s642_s22 }
  0x45   : > { %s644_s23 = scalar_lea.vmem %s643_s22, 64  ;;  %p645_p8 = scmp.lt.s32.totalorder %s199_s4, %s643_s22 }
  0x46   : > { %p640_p1 = pnand %p638_p9, %p594_p3  ;;  %p646_p11 = scmp.lt.s32.totalorder %s644_s23, %s637_s28 }
  0x48   : > { %p641_p6 = pneg %p640_p1  ;;  %p647_p2 = por %p646_p11, %p645_p8 }
  0x4a   : > { %p648_p5 = pnand %p647_p2, %p641_p6 }
  0x4c   : > { %651 = shalt.err (!%p648_p5)
}
  0x4d   : > { %521 = dma.hbm_to_vmem [thread:$0]  (!%p877_p0), %s922_s29, 32, %s199_s4, %s187_s6  }
  0x4e   : > { %p1104_p13 = scmp.ne.s32.totalorder %s1103_s21, 0 }
  0x4f   : > { %s947_s30 = sand.u32 (!%p1104_p13), 1, %s754_s13   ;;  %p1105_p3 = scmp.ne.s32.totalorder (!%p1104_p13), %s1098_s24, 0 }
  0x50   : > { %207 = sbr.rel (%p1104_p13) target bundleno = 169 (0xa9), region = 28  ;;  %s492_s8 = sshll.u32 (!%p1104_p13), %s947_s30, 3 }
  0x51   : > { %s210_s10 = scalar_lea.sflag (!%p1104_p13), [#allocation3], %s947_s30  ;;  %s213_s5 = scalar_lea.vmem (!%p1104_p13), [#allocation2], %s492_s8 }
  0x57   : > { %733 = dma.done.wait (%p1105_p3), %s210_s10, 128  }
  0x58   : > { %735 = vsyncadd (%p1105_p3), %s210_s10, 4294967168  ;;  %s493_s9 = sshll.u32 %s947_s30, 1  ;;  %s219_s21 = scalar_lea.sflag [#allocation6], %s947_s30 }
  0x59   : > { %s222_s29 = scalar_lea.vmem [#allocation5], %s493_s9 }
  0x5a   : > { %737 = dma.done.wait (%p1105_p3), %s219_s21, 32  }
  0x5b   : > { %739 = vsyncadd (%p1105_p3), %s219_s21, 4294967264  ;;  %s961_s4 = scalar_lea.vmem [#allocation7], %s493_s9  ;;  %v776_v0 = vmov 0.0   ;;  %s254_s6 = scalar_lea.vmem [#allocation8], %s493_s9  ;;  %v964_v1 = vld [vmem:[%s213_s5] sm:$0x3] }
  0x5c   : > { %259 = vst [vmem:[%s961_s4] sm:$0x3] %v776_v0  ;;  %260 = vst [vmem:[%s254_s6] sm:$0x3] %v776_v0  ;;  %v966_v2 = vld [vmem:[%s213_s5 + $0x2] sm:$0x3]  ;;  %v970_v4 = vld [vmem:[%s213_s5 + $0x4] sm:$0x3] }
  0x5d   : > { %v265_v3 = vmax.f32 %v964_v1, %v966_v2  ;;  %v972_v5 = vld [vmem:[%s213_s5 + $0x6] sm:$0x3]  ;;  %v974_v6 = vld [vmem:[%s222_s29] sm:$0x3]  ;;  %s502_s24 = sshll.u32 %s762_s15, 5  ;;  %s346_s7 = sshll.u32 %s254_s6, 4  ;;  %s999_s7 = int_to_ptr.vmem [resolvable:$true] %s346_s7 }
  0x5e   : > { %vm303_vm0 = vcmp.ne.s32.totalorder %v974_v6, 4294967295  ;;  %s997_s28 = scalar_lea.hbm %s1094_s3, %s502_s24  ;;  %s320_s18 = scalar_lea.sflag [#allocation9], %s947_s30 }
  0x5f   : > { %v268_v7 = vmax.f32 %v265_v3, %v970_v4  ;;  %v499_v10 = vsel %vm303_vm0, 1.0, %v776_v0  ;;  %s652_s22 = scalar_lea.vmem %s999_s7, 32  ;;  %p1106_p0 = scmp.ne.s32.totalorder %s1099_s25, 0 }
  0x60   : > { %p653_p8 = scmp.ne.s32.totalorder %s999_s7, %s652_s22  ;;  %s777_s23 = smov [#allocation8]  }
  0x61   : > { %v980_v9 = vmax.f32 %v268_v7, %v972_v5  ;;  %s656_s8 = sshll.u32 %s777_s23, 4  ;;  %s657_s8 = int_to_ptr.vmem [resolvable:$false] %s656_s8 }
  0x62   : > { %p654_p11 = pnand %p653_p8, %p1106_p0  ;;  %s658_s10 = scalar_lea.vmem %s657_s8, 64 }
  0x63   : > { %v311_v8 = vld [vmem:[%s254_s6] sm:$0x3]  ;;  %v272_v12 = vsub.f32 %v964_v1, %v980_v9  ;;  %v279_v13 = vsub.f32 %v966_v2, %v980_v9  ;;  %v286_v14 = vsub.f32 %v970_v4, %v980_v9  ;;  %v293_v15 = vsub.f32 %v972_v5, %v980_v9  ;;  %p659_p7 = scmp.lt.s32.totalorder %s999_s7, %s657_s8  ;;  %p660_p10 = scmp.lt.s32.totalorder %s658_s10, %s652_s22 }
  0x64   : > { %v312_v11 = vadd.f32 %v499_v10, %v311_v8  ;;  %p655_p4 = pneg %p654_p11 }
  0x65   : > { %v273_v16 = vmul.f32 1.442695, %v272_v12  ;;  %v280_v17 = vmul.f32 1.442695, %v279_v13  ;;  %v287_v18 = vmul.f32 1.442695, %v286_v14  ;;  %p661_p12 = por %p660_p10, %p659_p7 }
  0x66   : > { %313 = vst [vmem:[%s254_s6] sm:$0x3] %v312_v11  ;;  %v294_v19 = vmul.f32 1.442695, %v293_v15 }
  0x67   : > { %p662_p9 = pnand %p661_p12, %p655_p4 }
  0x69   : > { %665 = shalt.err (!%p662_p9)
}
  0x6a   : > { %s666_s5 = scalar_lea.hbm %s997_s28, 32  ;;  %s670_s29 = scalar_lea.hbm %s1094_s3, 64 }
  0x6b   : > { %p667_p1 = scmp.ne.s32.totalorder %s997_s28, %s666_s5  ;;  %p671_p5 = scmp.lt.u32.totalorder %s997_s28, %s1094_s3 }
  0x6c   : > { %p672_p13 = scmp.lt.u32.totalorder %s670_s29, %s666_s5  ;;  %p674_p8 = scmp.lt.u32.totalorder %s666_s5, %s997_s28 }
  0x6d   : > { %p668_p6 = pnand %p667_p1, %p1106_p0 }
  0x6e   : > { %p673_p3 = por %p672_p13, %p671_p5 }
  0x6f   : > { %p669_p2 = pneg %p668_p6 }
  0x70   : > { %p675_p11 = por %p674_p8, %p673_p3 }
  0x72   : > { %p676_p4 = pnand %p675_p11, %p669_p2 }
  0x74   : > { %679 = shalt.err (!%p676_p4)
}
  0x75   : > { %512 = dma.vmem_to_hbm [thread:$0]  (%p1106_p0), %s999_s7, 32, %s997_s28, %s320_s18   ;;  %582 = vpow2.f32 %v273_v16  ;;  %vm276_vm1 = vcmp.eq.s32.totalorder %v974_v6, 0  ;;  %vm283_vm2 = vcmp.eq.s32.totalorder %v974_v6, 1  ;;  %vm290_vm3 = vcmp.eq.s32.totalorder %v974_v6, 2  ;;  %v308_v38 = vld [vmem:[%s961_s4] sm:$0x3] }
  0x76   : > { %584 = vpow2.f32 %v280_v17  ;;  %v277_v27 = vsel %vm276_vm1, %v964_v1, 0.0  ;;  %v284_v28 = vsel %vm283_vm2, %v966_v2, 0.0  ;;  %v291_v30 = vsel %vm290_vm3, %v970_v4, 0.0  ;;  %s333_s7 = sshll.u32 %s961_s4, 4  ;;  %s1041_s18 = scalar_lea.hbm %s1093_s2, %s502_s24  ;;  %s1043_s7 = int_to_ptr.vmem [resolvable:$true] %s333_s7 }
  0x77   : > { %586 = vpow2.f32 %v287_v18  ;;  %v285_v29 = vadd.f32 %v284_v28, %v277_v27  ;;  %vm297_vm4 = vcmp.eq.s32.totalorder %v974_v6, 3  ;;  %s315_s22 = scalar_lea.sflag [#allocation4], %s947_s30  ;;  %s680_s23 = scalar_lea.vmem %s1043_s7, 32 }
  0x78   : > { %588 = vpow2.f32 %v294_v19  ;;  %v298_v32 = vsel %vm297_vm4, %v972_v5, 0.0  ;;  %p681_p7 = scmp.ne.s32.totalorder %s1043_s7, %s680_s23  ;;  %s778_s8 = smov [#allocation7]  }
  0x79   : > { %v292_v31 = vadd.f32 %v291_v30, %v285_v29  ;;  %s684_s10 = sshll.u32 %s778_s8, 4  ;;  %s685_s10 = int_to_ptr.vmem [resolvable:$false] %s684_s10 }
  0x7a   : > { %p682_p10 = pnand %p681_p7, %p1106_p0  ;;  %s686_s15 = scalar_lea.vmem %s685_s10, 64 }
  0x7b   : > { %v299_v34 = vadd.f32 %v298_v32, %v292_v31  ;;  %p687_p9 = scmp.lt.s32.totalorder %s1043_s7, %s685_s10  ;;  %p688_p1 = scmp.lt.s32.totalorder %s686_s15, %s680_s23 }
  0x7c   : > { %p683_p12 = pneg %p682_p10 }
  0x7d   : > { %p689_p6 = por %p688_p1, %p687_p9 }
  0x7f   : > { %v583_v20 = vpop.eup %582  ;;  %p690_p2 = pnand %p689_p6, %p683_p12 }
  0x80   : > { %v585_v21 = vpop.eup %584 }
  0x81   : > { %v587_v22 = vpop.eup %586  ;;  %v282_v23 = vadd.f32 %v585_v21, %v583_v20 }
  0x82   : > { %v589_v24 = vpop.eup %588 }
  0x83   : > { %v289_v25 = vadd.f32 %v587_v22, %v282_v23 }
  0x85   : > { %v296_v26 = vadd.f32 %v589_v24, %v289_v25 }
  0x87   : > { %590 = vlog2.f32 %v296_v26 }
  0x91   : > { %v591_v33 = vpop.eup %590 }
  0x92   : > { %v301_v35 = vmul.f32 0.6931472, %v591_v33 }
  0x94   : > { %v302_v36 = vadd.f32 %v301_v35, %v980_v9 }
  0x96   : > { %v304_v37 = vsub.f32 %v302_v36, %v299_v34 }
  0x98   : > { %v305_v39 = vsel %vm303_vm0, %v304_v37, 0.0 }
  0x99   : > { %v309_v40 = vadd.f32 %v308_v38, %v305_v39 }
  0x9b   : > { %310 = vst [vmem:[%s961_s4] sm:$0x3] %v309_v40 }
  0x9c   : > { %693 = shalt.err (!%p690_p2)
}
  0x9d   : > { %s694_s30 = scalar_lea.hbm %s1041_s18, 32  ;;  %s698_s5 = scalar_lea.hbm %s1093_s2, 64 }
  0x9e   : > { %p695_p5 = scmp.ne.s32.totalorder %s1041_s18, %s694_s30  ;;  %p699_p8 = scmp.lt.u32.totalorder %s1041_s18, %s1093_s2 }
  0x9f   : > { %p700_p11 = scmp.lt.u32.totalorder %s698_s5, %s694_s30  ;;  %p702_p7 = scmp.lt.u32.totalorder %s694_s30, %s1041_s18 }
  0xa0   : > { %p696_p13 = pnand %p695_p5, %p1106_p0 }
  0xa1   : > { %p701_p4 = por %p700_p11, %p699_p8 }
  0xa2   : > { %p697_p3 = pneg %p696_p13 }
  0xa3   : > { %p703_p10 = por %p702_p7, %p701_p4 }
  0xa5   : > { %p704_p12 = pnand %p703_p10, %p697_p3 }
  0xa7   : > { %707 = shalt.err (!%p704_p12)
}
  0xa8   : > { %511 = dma.vmem_to_hbm [thread:$0]  (%p1106_p0), %s1043_s7, 32, %s1041_s18, %s315_s22  }
  0xa9 PF: > { %s358_s29 = sand.u32 1, %s750_s12   ;;  %p1107_p9 = scmp.ne.s32.totalorder %s1100_s27, 0 }
  0xaa   : > { %p1108_p1 = scmp.ge.s32.totalorder %s770_s17, 2  ;;  %s359_s6 = scalar_lea.sflag [#allocation4], %s358_s29 }
  0xac   : > { %p523_p6 = pnand %p1108_p1, %p1107_p9 }
  0xae   : > { %741 = dma.done.wait (!%p523_p6), %s359_s6, 32  }
  0xaf   : > { %743 = vsyncadd (!%p523_p6), %s359_s6, 4294967264  ;;  %s368_s11 = scalar_lea.sflag [#allocation9], %s358_s29 }
  0xb0   : > { %745 = dma.done.wait (!%p523_p6), %s368_s11, 32  }
  0xb1   : > { %747 = vsyncadd (!%p523_p6), %s368_s11, 4294967264  ;;  %s26_s17 = sadd.s32 1, %s770_s17   ;;  %s1109_s12 = smov %s754_s13 }
  0xb2   : > { %p23_p2 = scmp.ge.s32.totalorder %s26_s17, 4   ;;  %s1110_s13 = smov %s758_s14 }
  0xb3   : > { %s1111_s14 = smov %s855_s26  ;;  %s1112_s15 = smov %s766_s16 }
  0xb4   : > { %s1113_s16 = smov %s1115_s20  ;;  %25 = sbr.rel (!%p23_p2) target bundleno = 10 (0xa), region = 110 }
  0xbb   :  { %373 = vsyncpa [#allocation3], 1 }
  0xbc   :  { %375 = vsyncpa [#allocation3 + $0x1], 1 }
  0xbd   :  { %376 = vsyncpa [#allocation6], 1 }
  0xbe   :  { %378 = vsyncpa [#allocation6 + $0x1], 1 }
  0xbf   :  { %379 = vsyncpa [#allocation4], 1 }
  0xc0   :  { %381 = vsyncpa [#allocation4 + $0x1], 1 }
  0xc1   :  { %382 = vsyncpa [#allocation9], 1 }
  0xc2   :  { %384 = vsyncpa [#allocation9 + $0x1], 1 }

</bundles_post_ra>
